<compile_context>
chip_gen: v7x
topology: tpu7x:2x2x1
jax: 0.10.0
libtpu: 0.0.40
codegen_flags: <defaults>
</compile_context>

<pallas_src>
import functools

import jax
import jax.numpy as jnp
from jax.experimental import pallas as pl
from jax.experimental.pallas import tpu as pltpu


# ----------------------------------------------------------------------------
# Pallas kernel
# ----------------------------------------------------------------------------
def _ddpm_kernel(xe_ref,   # (2, B*C, HWp)   stacked [x, eps], lane dim = HW
                 am_ref,   # (2, B*C, 1)     stacked [sqrtab[ts], sqrtmab[ts]] per row
                 w1_ref,   # (B*hidden, B*C) block-diagonal W1^T
                 b1_ref,   # (B*hidden, 1)   time-conditioned bias1, stacked per batch
                 w2_ref,   # (B*C, B*hidden) block-diagonal W2^T
                 b2_ref,   # (B*C, 1)        b2 tiled per batch
                 o_ref):   # (B*C, HWp)      eps prediction
    # Forward diffusion: one full-vreg elementwise pass over the whole batch.
    x_t = am_ref[0] * xe_ref[0] + am_ref[1] * xe_ref[1]              # (BC, HWp)

    # Pointwise 2-layer MLP, all batches in a single matmul per layer.
    h = jnp.dot(w1_ref[...], x_t, preferred_element_type=jnp.float32)  # (BH, HWp)
    h = jnp.maximum(h + b1_ref[...], 0.0)
    out = jnp.dot(w2_ref[...], h, preferred_element_type=jnp.float32) + b2_ref[...]

    o_ref[...] = out.astype(o_ref.dtype)                              # (BC, HWp)


# ----------------------------------------------------------------------------
# Wrapper (jitted so the tiny prep ops fuse with the pallas_call dispatch)
# ----------------------------------------------------------------------------
@functools.partial(jax.jit, static_argnames=("n_T",))
def ddpm_forward_pallas(x_nchw, ts, eps_nchw, sqrtab, sqrtmab, params, *, n_T):
    """Runs the fused DDPM forward. Returns (eps_pred_nchw, eps_nchw)."""
    B, C, H, W = x_nchw.shape
    HW = H * W
    hidden = params["w1"].shape[1]
    BC, BH = B * C, B * hidden

    # Lane-dense padding of the HW axis (no masked vst.msk stores).
    HWp = ((HW + 127) // 128) * 128
    pad = HWp - HW

    # Batch folded into the sublane axis: (B*C, HW). NCHW reshape is free.
    x = x_nchw.reshape(BC, HW)
    e = eps_nchw.reshape(BC, HW)
    if pad:
        x = jnp.pad(x, ((0, 0), (0, pad)))
        e = jnp.pad(e, ((0, 0), (0, pad)))
    xe = jnp.stack([x, e], axis=0)                                    # (2, BC, HWp)

    # Per-row diffusion scales (row b*C + c gets batch b's scalar).
    ts = ts.astype(jnp.int32)
    a = sqrtab[ts].astype(jnp.float32)                                # (B,)
    m = sqrtmab[ts].astype(jnp.float32)                               # (B,)
    am = jnp.stack([jnp.repeat(a, C).reshape(BC, 1),
                    jnp.repeat(m, C).reshape(BC, 1)], axis=0)         # (2, BC, 1)

    # Time conditioning folded into the first-layer bias, stacked per batch.
    tc = ts.astype(jnp.float32) / jnp.float32(n_T)                    # (B,)
    bias1 = (params["b1"] + tc[:, None] * params["wt"]).reshape(BH, 1)

    # Block-diagonal weights: one matmul per layer for the whole batch.
    eye_b = jnp.eye(B, dtype=jnp.float32)
    w1bd = jnp.kron(eye_b, params["w1"].T)                            # (BH, BC)
    w2bd = jnp.kron(eye_b, params["w2"].T)                            # (BC, BH)
    b2bd = jnp.tile(params["b2"].reshape(1, C), (B, 1)).reshape(BC, 1)

    pred = pl.pallas_call(
        _ddpm_kernel,
        out_shape=jax.ShapeDtypeStruct((BC, HWp), jnp.float32),
        grid=(1,),
        in_specs=[
            pl.BlockSpec((2, BC, HWp), lambda i: (0, 0, 0)),   # stacked x / eps
            pl.BlockSpec((2, BC, 1), lambda i: (0, 0, 0)),     # stacked a / m
            pl.BlockSpec((BH, BC), lambda i: (0, 0)),          # block-diag W1^T
            pl.BlockSpec((BH, 1), lambda i: (0, 0)),           # folded bias1
            pl.BlockSpec((BC, BH), lambda i: (0, 0)),          # block-diag W2^T
            pl.BlockSpec((BC, 1), lambda i: (0, 0)),           # tiled b2
        ],
        out_specs=pl.BlockSpec((BC, HWp), lambda i: (0, 0)),
        compiler_params=pltpu.CompilerParams(
            dimension_semantics=("arbitrary",)),
    )(xe, am, w1bd, bias1, w2bd, b2bd)

    pred = pred[:, :HW].reshape(B, C, H, W)
    return pred, eps_nchw


# ----------------------------------------------------------------------------
# DDPM schedule (matches the torch __init__ buffers)
# ----------------------------------------------------------------------------
def ddpm_schedules(beta1, beta2, n_T):
    assert 0.0 < beta1 < beta2 < 1.0
    beta_t = jnp.linspace(beta1, beta2, n_T + 1, dtype=jnp.float32)
    sqrt_beta_t = jnp.sqrt(beta_t)
    alpha_t = 1.0 - beta_t
    log_alpha_t = jnp.log(alpha_t)
    alphabar_t = jnp.exp(jnp.cumsum(log_alpha_t, axis=0))
    sqrtab = jnp.sqrt(alphabar_t)
    oneover_sqrta = 1.0 / jnp.sqrt(alpha_t)
    sqrtmab = jnp.sqrt(1.0 - alphabar_t)
    mab_over_sqrtmab_inv = (1.0 - alpha_t) / sqrtmab
    return dict(sqrt_beta_t=sqrt_beta_t, sqrtab=sqrtab, sqrtmab=sqrtmab,
                oneover_sqrta=oneover_sqrta,
                mab_over_sqrtmab_inv=mab_over_sqrtmab_inv)


# ----------------------------------------------------------------------------
# Pure-JAX reference (NCHW semantics identical to the torch code)
# ----------------------------------------------------------------------------
def ddpm_forward_ref(x_nchw, ts, eps_nchw, sqrtab, sqrtmab, params, n_T):
    B, C, H, W = x_nchw.shape
    a = sqrtab[ts][:, None, None, None]
    m = sqrtmab[ts][:, None, None, None]
    x_t = a * x_nchw + m * eps_nchw
    tc = ts.astype(jnp.float32) / n_T                                 # (B,)
    xb = jnp.transpose(x_t, (0, 2, 3, 1)).reshape(B, H * W, C)
    h = xb @ params["w1"] + params["b1"] + tc[:, None, None] * params["wt"]
    h = jnp.maximum(h, 0.0)
    out = h @ params["w2"] + params["b2"]
    return jnp.transpose(out.reshape(B, H, W, C), (0, 3, 1, 2)), eps_nchw


# ----------------------------------------------------------------------------
# Main
# ----------------------------------------------------------------------------
if __name__ == "__main__":
    B, C, H, W = 2, 4, 16, 16
    HIDDEN = 32
    N_T = 100
    BETA1, BETA2 = 1e-4, 0.02

    key = jax.random.PRNGKey(0)
    k_x, k_ts, k_eps, k_w1, k_wt, k_w2 = jax.random.split(key, 6)

    # Deterministic input + noise + timesteps (RNG lives in the JAX wrapper).
    x = jax.random.normal(k_x, (B, C, H, W), dtype=jnp.float32)
    ts = jax.random.randint(k_ts, (B,), 1, N_T + 1, dtype=jnp.int32)
    eps = jax.random.normal(k_eps, (B, C, H, W), dtype=jnp.float32)

    # Deterministic synthetic eps_model parameters (pointwise MLP + time embed).
    params = {
        "w1": jax.random.normal(k_w1, (C, HIDDEN), dtype=jnp.float32) * 0.1,
        "b1": jnp.zeros((1, HIDDEN), dtype=jnp.float32),
        "wt": jax.random.normal(k_wt, (1, HIDDEN), dtype=jnp.float32) * 0.1,
        "w2": jax.random.normal(k_w2, (HIDDEN, C), dtype=jnp.float32) * 0.1,
        "b2": jnp.zeros((1, C), dtype=jnp.float32),
    }

    sched = ddpm_schedules(BETA1, BETA2, N_T)

    pred, eps_out = ddpm_forward_pallas(
        x, ts, eps, sched["sqrtab"], sched["sqrtmab"], params, n_T=N_T)
    pred = jax.block_until_ready(pred)
    eps_out = jax.block_until_ready(eps_out)

    pred_ref, _ = ddpm_forward_ref(
        x, ts, eps, sched["sqrtab"], sched["sqrtmab"], params, N_T)

    assert pred.shape == (B, C, H, W)
    assert eps_out.shape == (B, C, H, W)
    assert jnp.allclose(pred, pred_ref, atol=1e-4, rtol=1e-4)
    assert jnp.allclose(eps_out, eps, atol=0.0)

    # TODO(synk): `sample()` (reverse diffusion loop) is host-level control flow
    # around repeated eps_model calls; only the forward pass is kernelized here.
    print("KERNEL_OK")
</pallas_src>

<mosaic_0001>
module attributes {stable_mosaic.version = 11 : i64} {
  func.func @_ddpm_kernel(%arg0: i32, %arg1: memref<2x8x256xf32, #tpu.memory_space<vmem>>, %arg2: memref<2x8x1xf32, #tpu.memory_space<vmem>>, %arg3: memref<64x8xf32, #tpu.memory_space<vmem>>, %arg4: memref<64x1xf32, #tpu.memory_space<vmem>>, %arg5: memref<8x64xf32, #tpu.memory_space<vmem>>, %arg6: memref<8x1xf32, #tpu.memory_space<vmem>>, %arg7: memref<8x256xf32, #tpu.memory_space<vmem>>) attributes {dimension_semantics = [#tpu.dimension_semantics<arbitrary>], iteration_bounds = array<i64: 1>, scalar_prefetch = 0 : i64, scratch_operands = 0 : i64, tpu.core_type = #tpu.core_type<tc>, window_params = [{pipeline_mode = #tpu.pipeline_mode<synchronous>, transform_indices = @transform_0, window_bounds = array<i64: 2, 8, 256>}, {pipeline_mode = #tpu.pipeline_mode<synchronous>, transform_indices = @transform_1, window_bounds = array<i64: 2, 8, 1>}, {pipeline_mode = #tpu.pipeline_mode<synchronous>, transform_indices = @transform_2, window_bounds = array<i64: 64, 8>}, {pipeline_mode = #tpu.pipeline_mode<synchronous>, transform_indices = @transform_3, window_bounds = array<i64: 64, 1>}, {pipeline_mode = #tpu.pipeline_mode<synchronous>, transform_indices = @transform_4, window_bounds = array<i64: 8, 64>}, {pipeline_mode = #tpu.pipeline_mode<synchronous>, transform_indices = @transform_5, window_bounds = array<i64: 8, 1>}, {pipeline_mode = #tpu.pipeline_mode<synchronous>, transform_indices = @transform_6, window_bounds = array<i64: 8, 256>}]} {
    %c0 = arith.constant 0 : index
    %c0_0 = arith.constant 0 : index
    %c0_1 = arith.constant 0 : index
    %0 = vector.load %arg2[%c0, %c0_0, %c0_1] : memref<2x8x1xf32, #tpu.memory_space<vmem>>, vector<1x8x1xf32>
    %1 = vector.shape_cast %0 : vector<1x8x1xf32> to vector<8x1xf32>
    %c0_2 = arith.constant 0 : index
    %c0_3 = arith.constant 0 : index
    %c0_4 = arith.constant 0 : index
    %2 = vector.load %arg1[%c0_2, %c0_3, %c0_4] : memref<2x8x256xf32, #tpu.memory_space<vmem>>, vector<1x8x256xf32>
    %3 = vector.shape_cast %2 : vector<1x8x256xf32> to vector<8x256xf32>
    %4 = vector.broadcast %1 : vector<8x1xf32> to vector<8x256xf32>
    %5 = arith.mulf %4, %3 : vector<8x256xf32>
    %c1 = arith.constant 1 : index
    %c0_5 = arith.constant 0 : index
    %c0_6 = arith.constant 0 : index
    %6 = vector.load %arg2[%c1, %c0_5, %c0_6] : memref<2x8x1xf32, #tpu.memory_space<vmem>>, vector<1x8x1xf32>
    %7 = vector.shape_cast %6 : vector<1x8x1xf32> to vector<8x1xf32>
    %c1_7 = arith.constant 1 : index
    %c0_8 = arith.constant 0 : index
    %c0_9 = arith.constant 0 : index
    %8 = vector.load %arg1[%c1_7, %c0_8, %c0_9] : memref<2x8x256xf32, #tpu.memory_space<vmem>>, vector<1x8x256xf32>
    %9 = vector.shape_cast %8 : vector<1x8x256xf32> to vector<8x256xf32>
    %10 = vector.broadcast %7 : vector<8x1xf32> to vector<8x256xf32>
    %11 = arith.mulf %10, %9 : vector<8x256xf32>
    %12 = arith.addf %5, %11 : vector<8x256xf32>
    %c0_10 = arith.constant 0 : index
    %c0_11 = arith.constant 0 : index
    %13 = vector.load %arg3[%c0_10, %c0_11] : memref<64x8xf32, #tpu.memory_space<vmem>>, vector<64x8xf32>
    %cst = arith.constant dense<0.000000e+00> : vector<64x256xf32>
    %14 = tpu.matmul %13, %12, %cst {dimension_numbers = #tpu.dot_dimension_numbers<[1], [0], [0], [1], [0, 0, 1, 1], [], []>} : vector<64x8xf32>, vector<8x256xf32>, vector<64x256xf32> -> vector<64x256xf32>
    %c0_12 = arith.constant 0 : index
    %c0_13 = arith.constant 0 : index
    %15 = vector.load %arg4[%c0_12, %c0_13] : memref<64x1xf32, #tpu.memory_space<vmem>>, vector<64x1xf32>
    %16 = vector.broadcast %15 : vector<64x1xf32> to vector<64x256xf32>
    %17 = arith.addf %14, %16 : vector<64x256xf32>
    %cst_14 = arith.constant 0.000000e+00 : f32
    %18 = vector.broadcast %cst_14 : f32 to vector<64x256xf32>
    %19 = arith.maximumf %17, %18 : vector<64x256xf32>
    %c0_15 = arith.constant 0 : index
    %c0_16 = arith.constant 0 : index
    %20 = vector.load %arg5[%c0_15, %c0_16] : memref<8x64xf32, #tpu.memory_space<vmem>>, vector<8x64xf32>
    %cst_17 = arith.constant dense<0.000000e+00> : vector<8x256xf32>
    %21 = tpu.matmul %20, %19, %cst_17 {dimension_numbers = #tpu.dot_dimension_numbers<[1], [0], [0], [1], [0, 0, 1, 1], [], []>} : vector<8x64xf32>, vector<64x256xf32>, vector<8x256xf32> -> vector<8x256xf32>
    %c0_18 = arith.constant 0 : index
    %c0_19 = arith.constant 0 : index
    %22 = vector.load %arg6[%c0_18, %c0_19] : memref<8x1xf32, #tpu.memory_space<vmem>>, vector<8x1xf32>
    %23 = vector.broadcast %22 : vector<8x1xf32> to vector<8x256xf32>
    %24 = arith.addf %21, %23 : vector<8x256xf32>
    %c0_20 = arith.constant 0 : index
    %c0_21 = arith.constant 0 : index
    %25 = vector.load %arg7[%c0_20, %c0_21] : memref<8x256xf32, #tpu.memory_space<vmem>>, vector<8x256xf32>
    tpu.vector_store %arg7[%c0_20, %c0_21], %24 {strides = array<i32>} : memref<8x256xf32, #tpu.memory_space<vmem>>, vector<8x256xf32>,
    return
  }
  func.func @transform_0(%arg0: i32) -> (i32, i32, i32) {
    %c0_i32 = arith.constant 0 : i32
    %c0_i32_0 = arith.constant 0 : i32
    %c0_i32_1 = arith.constant 0 : i32
    %c0_i32_2 = arith.constant 0 : i32
    return %c0_i32, %c0_i32_0, %c0_i32_1 : i32, i32, i32
  }
  func.func @transform_1(%arg0: i32) -> (i32, i32, i32) {
    %c0_i32 = arith.constant 0 : i32
    %c0_i32_0 = arith.constant 0 : i32
    %c0_i32_1 = arith.constant 0 : i32
    %c0_i32_2 = arith.constant 0 : i32
    return %c0_i32, %c0_i32_0, %c0_i32_1 : i32, i32, i32
  }
  func.func @transform_2(%arg0: i32) -> (i32, i32) {
    %c0_i32 = arith.constant 0 : i32
    %c0_i32_0 = arith.constant 0 : i32
    %c0_i32_1 = arith.constant 0 : i32
    return %c0_i32, %c0_i32_0 : i32, i32
  }
  func.func @transform_3(%arg0: i32) -> (i32, i32) {
    %c0_i32 = arith.constant 0 : i32
    %c0_i32_0 = arith.constant 0 : i32
    %c0_i32_1 = arith.constant 0 : i32
    return %c0_i32, %c0_i32_0 : i32, i32
  }
  func.func @transform_4(%arg0: i32) -> (i32, i32) {
    %c0_i32 = arith.constant 0 : i32
    %c0_i32_0 = arith.constant 0 : i32
    %c0_i32_1 = arith.constant 0 : i32
    return %c0_i32, %c0_i32_0 : i32, i32
  }
  func.func @transform_5(%arg0: i32) -> (i32, i32) {
    %c0_i32 = arith.constant 0 : i32
    %c0_i32_0 = arith.constant 0 : i32
    %c0_i32_1 = arith.constant 0 : i32
    return %c0_i32, %c0_i32_0 : i32, i32
  }
  func.func @transform_6(%arg0: i32) -> (i32, i32) {
    %c0_i32 = arith.constant 0 : i32
    %c0_i32_0 = arith.constant 0 : i32
    %c0_i32_1 = arith.constant 0 : i32
    return %c0_i32, %c0_i32_0 : i32, i32
  }
}

</mosaic_0001>

<bundles_post_ra>
// kernel: tile.8
= control target key start
LH: loop header
LB: loop body
LE: loop exit
PB: predicated region body
PF: predicated region fallthrough
CT: control target
= control target key end

     0   :  { %s22_s0 = inlined_call_operand.vmem [shape: f32[4], index: 0, kind: input, shape index: {}]   ;;  %s23_s1 = inlined_call_operand.vmem [shape: f32[2,1,1,4], index: 1, kind: output, shape index: {}]  }
   0x1   :  { %v4_v0 = vld [vmem:[%s22_s0] ss:$0 sm:$0xff] }
   0x2   :  { %5 = vst [vmem:[%s23_s1] sm:$0x3] %v4_v0 }

// kernel: tile.0
= control target key start
LH: loop header
LB: loop body
LE: loop exit
PB: predicated region body
PF: predicated region fallthrough
CT: control target
= control target key end

     0   :  { %s34_s8 = smov 125   ;;  %vm7_vm0 = vcmask 7168   ;;  %s35_s11 = smov 126   ;;  %s61_s0 = inlined_call_operand.vmem [shape: f32[2,1,1,4], index: 0, kind: input, shape index: {}]   ;;  %s62_s1 = inlined_call_operand.vmem [shape: f32[8,1], index: 1, kind: output, shape index: {}]  }
   0x1   :  { %v4_v0 = vld [vmem:[%s61_s0] sm:$0x3]  ;;  %s33_s0 = smov 127  }
   0x2   :  { %5 = vst [vmem:[#allocation0] sm:$0x3] %v4_v0 }
   0x9   :  { %v9_v1 = vld [vmem:[#allocation0] sm:$0x3]  }
   0xa   :  { %v21_v2 = vld [vmem:[#allocation0] sm:$0x3]   ;;  %10 = vrot.lane.b32.xlu0 %v9_v1, %s33_s0 }
   0xb   :  { %22 = vrot.lane.b32.xlu1 %v21_v2, %s34_s8  ;;  %v6_v3 = vld [vmem:[#allocation0] sm:$0x3]  }
   0xc   :  { %v15_v4 = vld [vmem:[#allocation0] sm:$0x3]   ;;  %8 = vst.msk [vmem:[%s62_s1] ss:$4 sm:$0x3] %vm7_vm0, %v6_v3  }
   0xe   :  { %16 = vrot.lane.b32.xlu0 %v15_v4, %s35_s11 }
  0x7c   :  { %v11_v5 = vpop.permute.xlu0 %10  }
  0x7d   :  { %v23_v6 = vpop.permute.xlu1 %22   ;;  %27 = vst.msk [vmem:[%s62_s1 + $0x1] ss:$4 sm:$0x3] %vm7_vm0, %v11_v5  }
  0x7e   :  { %29 = vst.msk [vmem:[%s62_s1 + $0x3] ss:$4 sm:$0x3] %vm7_vm0, %v23_v6  }
  0x80   :  { %v17_v7 = vpop.permute.xlu0 %16  }
  0x81   :  { %28 = vst.msk [vmem:[%s62_s1 + $0x2] ss:$4 sm:$0x3] %vm7_vm0, %v17_v7  }

// kernel: ddpm_forward_pallas.1
= control target key start
LH: loop header
LB: loop body
LE: loop exit
PB: predicated region body
PF: predicated region fallthrough
CT: control target
= control target key end

     0   :  { %v377_v0 = vmov 0   ;;  %v378_v5 = vmov 0.0   ;;  %vm103_vm0 = vcmask 64512   ;;  %vm264_vm1 = vcmask 523264   ;;  %s500_s1 = inlined_call_operand.vmem [shape: f32[2,8,1], index: 1, kind: input, shape index: {}]   ;;  %s501_s3 = inlined_call_operand.vmem [shape: f32[64,1], index: 3, kind: input, shape index: {}]   ;;  %s502_s5 = inlined_call_operand.vmem [shape: f32[8,1], index: 5, kind: input, shape index: {}]   ;;  %s503_s0 = inlined_call_operand.vmem [shape: f32[2,8,256], index: 0, kind: input, shape index: {}]   ;;  %s504_s2 = inlined_call_operand.vmem [shape: f32[64,8], index: 2, kind: input, shape index: {}]   ;;  %s505_s4 = inlined_call_operand.vmem [shape: f32[8,64], index: 4, kind: input, shape index: {}]   ;;  %s506_s6 = inlined_call_operand.vmem [shape: f32[8,256], index: 6, kind: output, shape index: {}]  }
   0x1   :  { %375 = vset.pattern.permute.xlu0 %v377_v0  ;;  %v23_v1 = vld [vmem:[%s500_s1] sm:$0xff]  ;;  %376 = vset.pattern.permute.xlu1 %v377_v0  ;;  %v345_v2 = vld [vmem:[%s500_s1 + $0x8] sm:$0xff]  ;;  %v57_v3 = vld [vmem:[%s501_s3 + $0x10] sm:$0xff] }
   0x2   :  { %28 = vperm.xlu0 %375, %v23_v1   ;;  %v59_v4 = vld [vmem:[%s501_s3 + $0x20] sm:$0xff]  ;;  %192 = vmatprep.mubr.f32.mxu0 %v378_v5  ;;  %v61_v6 = vld [vmem:[%s501_s3 + $0x30] sm:$0xff]  ;;  %v56_v9 = vld [vmem:[%s501_s3 + $0x8] sm:$0xff] }
   0x3   :  { %332 = vmatprep.mubr.f32.mxu1 %v378_v5  ;;  %v258_v7 = vld [vmem:[%s502_s5] sm:$0xff]  ;;  %v58_v10 = vld [vmem:[%s501_s3 + $0x18] sm:$0xff]  ;;  %v60_v11 = vld [vmem:[%s501_s3 + $0x28] sm:$0xff] }
   0x4   :  { %v55_v8 = vld [vmem:[%s501_s3] sm:$0xff]  ;;  %v62_v12 = vld [vmem:[%s501_s3 + $0x38] sm:$0xff]  ;;  %v25_v15 = vld [vmem:[%s503_s0 + $0x8] sm:$0xff] }
   0x5   :  { %65 = vperm.xlu1 %376, %v55_v8   ;;  %v24_v14 = vld [vmem:[%s503_s0] sm:$0xff]  ;;  %v346_v16 = vld [vmem:[%s503_s0 + $0x10] sm:$0xff]  ;;  %v347_v17 = vld [vmem:[%s503_s0 + $0x18] sm:$0xff] }
   0x6   :  { %40 = vperm.xlu0 %375, %v345_v2   ;;  %v47_v25 = vld [vmem:[%s504_s2] sm:$0xff]  ;;  %v48_v26 = vld [vmem:[%s504_s2 + $0x8] sm:$0xff]  ;;  %v49_v27 = vld [vmem:[%s504_s2 + $0x10] sm:$0xff] }
   0x7   :  { %v50_v28 = vld [vmem:[%s504_s2 + $0x18] sm:$0xff]  ;;  %v51_v29 = vld [vmem:[%s504_s2 + $0x20] sm:$0xff]  ;;  %v52_v30 = vld [vmem:[%s504_s2 + $0x28] sm:$0xff] }
   0x8   :  { %v53_v31 = vld [vmem:[%s504_s2 + $0x30] sm:$0xff]  ;;  %v54_v32 = vld [vmem:[%s504_s2 + $0x38] sm:$0xff] }
   0x9   :  { %70 = vperm.xlu1 %376, %v56_v9  }
   0xa   :  { %75 = vperm.xlu0 %375, %v57_v3  }
   0xd   :  { %80 = vperm.xlu1 %376, %v58_v10  }
   0xe   :  { %85 = vperm.xlu0 %375, %v59_v4  }
  0x11   :  { %90 = vperm.xlu1 %376, %v60_v11  }
  0x12   :  { %95 = vperm.xlu0 %375, %v61_v6  }
  0x15   :  { %100 = vperm.xlu1 %376, %v62_v12  }
  0x16   :  { %261 = vperm.xlu0 %375, %v258_v7  }
  0x81   :  { %v29_v13 = vpop.permute.xlu0 %28 }
  0x82   :  { %v31_v19 = vmul.f32 %v29_v13, %v24_v14  ;;  %v32_v20 = vmul.f32 %v29_v13, %v25_v15 }
  0x84   :  { %v66_v33 = vpop.permute.xlu1 %65 }
  0x85   :  { %v41_v18 = vpop.permute.xlu0 %40 }
  0x86   :  { %v43_v21 = vmul.f32 %v346_v16, %v41_v18  ;;  %v44_v22 = vmul.f32 %v347_v17, %v41_v18 }
  0x88   :  { %v46_v23 = vadd.f32 %v44_v22, %v32_v20  ;;  %v45_v24 = vadd.f32 %v43_v21, %v31_v19  ;;  %v71_v37 = vpop.permute.xlu1 %70 }
  0x89   :  { %v76_v50 = vpop.permute.xlu0 %75 }
  0x8a   :  { %128 = vmatprep.subr.mxu0 %v46_v23 }
  0x8b   :  { %129 = vmatpush1.msra.mxu0 %v45_v24 }
  0x8c   :  { %348 = vmatmul.mubr.msk.f32.vlgmr.msra.gmra.mrb[0].mxu0 %vm103_vm0, %v47_v25  ;;  %v81_v53 = vpop.permute.xlu1 %80 }
  0x8d   :  { %198 = vmatprep.mubr.f32.mxu0 %v378_v5  ;;  %v86_v2 = vpop.permute.xlu0 %85 }
  0x90   :  { %349 = vmatmul.mubr.msk.f32.gmra.mrb[2].mxu0 %vm103_vm0, %v48_v26 }
  0x91   :  { %204 = vmatprep.mubr.f32.mxu0 %v378_v5  ;;  %v96_v18 = vpop.permute.xlu0 %95 }
  0x94   :  { %350 = vmatmul.mubr.msk.f32.gmra.mrb[4].mxu0 %vm103_vm0, %v49_v27 }
  0x95   :  { %210 = vmatprep.mubr.f32.mxu0 %v378_v5 }
  0x98   :  { %351 = vmatmul.mubr.msk.f32.gmra.mrb[6].mxu0 %vm103_vm0, %v50_v28 }
  0x99   :  { %216 = vmatprep.mubr.f32.mxu0 %v378_v5 }
  0x9c   :  { %352 = vmatmul.mubr.msk.f32.gmra.mrb[8].mxu0 %vm103_vm0, %v51_v29 }
  0x9d   :  { %222 = vmatprep.mubr.f32.mxu0 %v378_v5 }
  0xa0   :  { %353 = vmatmul.mubr.msk.f32.gmra.mrb[10].mxu0 %vm103_vm0, %v52_v30 }
  0xa1   :  { %228 = vmatprep.mubr.f32.mxu0 %v378_v5 }
  0xa4   :  { %354 = vmatmul.mubr.msk.f32.gmra.mrb[12].mxu0 %vm103_vm0, %v53_v31 }
  0xa5   :  { %234 = vmatprep.mubr.f32.mxu0 %v378_v5  ;;  %v91_v5 = vpop.permute.xlu1 %90 }
  0xa8   :  { %355 = vmatmul.mubr.msk.f32.gmra.mrb[14].mxu0 %vm103_vm0, %v54_v32 }
  0xa9   :  { %v101_v21 = vpop.permute.xlu1 %100 }
 0x15f   :  { %v194_v34 = vpop.f32.mrb[0].mxu0 }
 0x160   :  { %v196_v35 = vpop.f32.mrb[1].mxu0  ;;  %v195_v36 = vadd.f32 %v194_v34, %v66_v33  ;;  %v262_v34 = vpop.permute.xlu0 %261 }
 0x161   :  { %v197_v38 = vadd.f32 %v196_v35, %v66_v33  ;;  %v257_v33 = vld [vmem:[%s505_s4] sm:$0xff] }
 0x162   :  { %v241_v43 = vmax.f32 %v195_v36, 0.0 }
 0x163   :  { %v200_v39 = vpop.f32.mrb[2].mxu0  ;;  %v242_v45 = vmax.f32 %v197_v38, 0.0 }
 0x164   :  { %v201_v40 = vadd.f32 %v200_v39, %v71_v37  ;;  %v202_v41 = vpop.f32.mrb[3].mxu0 }
 0x165   :  { %v203_v42 = vadd.f32 %v202_v41, %v71_v37 }
 0x166   :  { %v243_v44 = vmax.f32 %v201_v40, 0.0 }
 0x167   :  { %v244_v46 = vmax.f32 %v203_v42, 0.0  ;;  %v206_v47 = vpop.f32.mrb[4].mxu0 }
 0x168   :  { %v208_v48 = vpop.f32.mrb[5].mxu0  ;;  %v359_v49 = vpack.c.bf16 %v243_v44, %v241_v43  ;;  %v207_v52 = vadd.f32 %v206_v47, %v76_v50 }
 0x169   :  { %v357_v51 = vpack.c.bf16 %v244_v46, %v242_v45  ;;  %v209_v54 = vadd.f32 %v208_v48, %v76_v50 }
 0x16a   :  { %v245_v59 = vmax.f32 %v207_v52, 0.0 }
 0x16b   :  { %v212_v55 = vpop.f32.mrb[6].mxu0  ;;  %358 = vmatprep.subr.bf16.mxu1 %v357_v51  ;;  %v246_v61 = vmax.f32 %v209_v54, 0.0 }
 0x16c   :  { %v213_v56 = vadd.f32 %v212_v55, %v81_v53  ;;  %v214_v57 = vpop.f32.mrb[7].mxu0  ;;  %360 = vmatpush1.bf16.msra.mxu1 %v359_v49 }
 0x16d   :  { %v215_v58 = vadd.f32 %v214_v57, %v81_v53 }
 0x16e   :  { %v247_v60 = vmax.f32 %v213_v56, 0.0 }
 0x16f   :  { %v248_v62 = vmax.f32 %v215_v58, 0.0  ;;  %v218_v63 = vpop.f32.mrb[8].mxu0 }
 0x170   :  { %v363_v0 = vpack.c.bf16 %v247_v60, %v245_v59  ;;  %v220_v1 = vpop.f32.mrb[9].mxu0  ;;  %v219_v4 = vadd.f32 %v218_v63, %v86_v2 }
 0x171   :  { %v361_v3 = vpack.c.bf16 %v248_v62, %v246_v61  ;;  %v221_v6 = vadd.f32 %v220_v1, %v86_v2 }
 0x172   :  { %v249_v11 = vmax.f32 %v219_v4, 0.0 }
 0x173   :  { %v224_v7 = vpop.f32.mrb[10].mxu0  ;;  %362 = vmatprep.subr.bf16.mxu1 %v361_v3  ;;  %v250_v13 = vmax.f32 %v221_v6, 0.0 }
 0x174   :  { %v225_v8 = vadd.f32 %v224_v7, %v91_v5  ;;  %v226_v9 = vpop.f32.mrb[11].mxu0  ;;  %364 = vmatpush1.bf16.msra.mxu1 %v363_v0 }
 0x175   :  { %v227_v10 = vadd.f32 %v226_v9, %v91_v5 }
 0x176   :  { %v251_v12 = vmax.f32 %v225_v8, 0.0 }
 0x177   :  { %v252_v14 = vmax.f32 %v227_v10, 0.0  ;;  %v230_v15 = vpop.f32.mrb[12].mxu0 }
 0x178   :  { %v367_v16 = vpack.c.bf16 %v251_v12, %v249_v11  ;;  %v232_v17 = vpop.f32.mrb[13].mxu0  ;;  %v231_v20 = vadd.f32 %v230_v15, %v96_v18 }
 0x179   :  { %v365_v19 = vpack.c.bf16 %v252_v14, %v250_v13  ;;  %v233_v22 = vadd.f32 %v232_v17, %v96_v18 }
 0x17a   :  { %v253_v27 = vmax.f32 %v231_v20, 0.0 }
 0x17b   :  { %v236_v23 = vpop.f32.mrb[14].mxu0  ;;  %366 = vmatprep.subr.bf16.mxu1 %v365_v19  ;;  %v254_v29 = vmax.f32 %v233_v22, 0.0 }
 0x17c   :  { %v237_v24 = vadd.f32 %v236_v23, %v101_v21  ;;  %v238_v25 = vpop.f32.mrb[15].mxu0  ;;  %368 = vmatpush1.bf16.msra.mxu1 %v367_v16 }
 0x17d   :  { %v239_v26 = vadd.f32 %v238_v25, %v101_v21 }
 0x17e   :  { %v255_v28 = vmax.f32 %v237_v24, 0.0 }
 0x17f   :  { %v256_v30 = vmax.f32 %v239_v26, 0.0 }
 0x180   :  { %v371_v31 = vpack.c.bf16 %v255_v28, %v253_v27 }
 0x181   :  { %v369_v32 = vpack.c.bf16 %v256_v30, %v254_v29 }
 0x183   :  { %370 = vmatprep.subr.bf16.mxu1 %v369_v32 }
 0x184   :  { %372 = vmatpush1.bf16.msra.mxu1 %v371_v31 }
 0x187   :  { %356 = vmatmul.mubr.msk.f32.vlgmr.msra.gmra.mrb[0].mxu1 %vm264_vm1, %v257_v33 }
 0x25a   :  { %v334_v35 = vpop.f32.mrb[0].mxu1 }
 0x25b   :  { %v335_v36 = vadd.f32 %v334_v35, %v262_v34  ;;  %v336_v37 = vpop.f32.mrb[1].mxu1 }
 0x25c   :  { %v337_v38 = vadd.f32 %v336_v37, %v262_v34 }
 0x25d   :  { %339 = vst [vmem:[%s506_s6] sm:$0xff] %v335_v36 }
 0x25e   :  { %340 = vst [vmem:[%s506_s6 + $0x8] sm:$0xff] %v337_v38 }

</bundles_post_ra>
